<compile_context>
chip_gen: v7x
topology: tpu7x:2x2x1
jax: 0.10.0
libtpu: 0.0.40
codegen_flags: <defaults>
</compile_context>

<pallas_src>
import jax
import jax.numpy as jnp
from jax.experimental import pallas as pl
from jax.experimental.pallas import tpu as pltpu


_DEFAULT_FEATS_BLOCK_BYTES = 4 * 1024 * 1024    # padded bf16 feats bytes / grid step
_DEFAULT_VMEM_LIMIT_BYTES = 48 * 1024 * 1024    # < v7x's 64 MiB physical VMEM


def _round_up(x, m):
    return ((x + m - 1) // m) * m


def _pick_tile_b(B, A, D, feats_block_bytes=_DEFAULT_FEATS_BLOCK_BYTES):
    """Batch rows per grid step, sized by VMEM footprint (not MXU rows)."""
    # VMEM-resident bytes of one batch row of the bf16 feats block, including
    # sublane (16 for bf16) and lane (128) padding.
    per_row = _round_up(A, 16) * _round_up(D, 128) * 2
    budget = max(8, feats_block_bytes // per_row)
    if budget >= B:
        # Whole batch fits in one block. When B is large enough, still split
        # into >= 2 grid steps so both v7x TensorCores get work.
        if B >= 16:
            return min(B, _round_up(pl.cdiv(B, 2), 8))
        return B
    return max(8, (budget // 8) * 8)


def attention_kernel(key_ref, feats_ref, mask_ref,
                     wk_ref, wf_ref, small_ref, ba_ref,
                     att_ref, weight_ref):
    # One grid step == tile_b batch elements.
    tb, A, D = feats_ref.shape
    H = wf_ref.shape[1]

    feats = feats_ref[...]                                   # (tb, A, D) bf16
    # Collapse leading dims: a layout no-op when A % 8 == 0 (A=16 here);
    # otherwise still correct, Mosaic inserts a relayout (perf hazard only).
    feats2d = feats.reshape(tb * A, D)

    # feat2att: one big MXU matmul, bf16 operands, f32 accumulation.
    # Its bias is folded into the att_k side (softmax-irrelevant placement).
    att_f = jnp.dot(feats2d, wf_ref[...],
                    preferred_element_type=jnp.float32)      # (tb*A, H) f32

    bias = small_ref[0:1, :]                                  # (1, H) = bf + bk
    wa_row = small_ref[1:2, :]                                # (1, H)

    # key2att: tiny matmul on (tb, K); folded bias added here (small tensor).
    att_k = jnp.dot(key_ref[...], wk_ref[...],
                    preferred_element_type=jnp.float32) + bias     # (tb, H)

    dot = jnp.tanh(att_f.reshape(tb, A, H) + att_k[:, None, :])     # (tb, A, H) f32

    # to_alpha: VPU multiply + lane reduction (instead of an N=1 MXU matmul).
    alpha = jnp.sum(dot * wa_row.reshape(1, 1, H), axis=-1)         # (tb, A)
    alpha = alpha + ba_ref[...]                                      # broadcast (1,1)

    # masked_fill(mask == 0, -1e9)
    alpha = jnp.where(mask_ref[...] == 0.0,
                      jnp.float32(-1000000000.0), alpha)

    # softmax over the attention axis A (lane axis), f32 throughout.
    m = jnp.max(alpha, axis=-1, keepdims=True)
    e = jnp.exp(alpha - m)
    s = jnp.sum(e, axis=-1, keepdims=True)
    w = e * pl.reciprocal(s, approx=True)                            # (tb, A) f32
    # TODO(synk): nn.Dropout on the attention weights is omitted
    # (inference / eval-mode semantics: identity).

    # Weighted sum as a batched MXU matmul: (tb,1,A) @ (tb,A,D) -> (tb,1,D).
    # Output bytes are ~10x smaller than the feats read, so the M=1 matmuls
    # are not the binding slot in this HBM-bound regime.
    att = jnp.einsum('tqa,tad->tqd',
                     w[:, None, :].astype(feats.dtype), feats,
                     preferred_element_type=jnp.float32)             # (tb, 1, D)

    att_ref[...] = att.reshape(tb, D).astype(att_ref.dtype)          # (tb, D)
    weight_ref[...] = w.astype(weight_ref.dtype)                     # (tb, A)


def attention_forward(key_vec, feats, feat_masks, params,
                      tile_b=None,
                      feats_block_bytes=_DEFAULT_FEATS_BLOCK_BYTES,
                      vmem_limit_bytes=_DEFAULT_VMEM_LIMIT_BYTES):
    """Pallas implementation of Attention.forward(key, feats, feat_masks)."""
    B, A, D = feats.shape
    K = key_vec.shape[1]
    H = params["wf"].shape[1]

    # bf16 MXU operands (halves HBM traffic on the dominant feats tensor).
    # Accumulation, tanh, softmax stay in f32 inside the kernel.
    feats_bf = feats.astype(jnp.bfloat16)
    key_bf = key_vec.astype(jnp.bfloat16)
    wf_bf = params["wf"].astype(jnp.bfloat16)
    wk_bf = params["wk"].astype(jnp.bfloat16)

    mask2 = feat_masks.astype(jnp.float32)

    # Fold the two linear biases into one row and pack with the to_alpha
    # weight: one small (2, H) VMEM block instead of four sub-(8,128) blocks.
    bias_row = (params["bf"] + params["bk"]).reshape(1, H)
    wa_row = params["wa"].reshape(1, H)
    small = jnp.concatenate([bias_row, wa_row], axis=0).astype(jnp.float32)  # (2, H)
    ba = params["ba"].reshape(1, 1).astype(jnp.float32)

    if tile_b is None:
        tile_b = _pick_tile_b(B, A, D, feats_block_bytes)
    tile_b = int(min(tile_b, B))

    grid = (pl.cdiv(B, tile_b),)

    out_shape = (
        jax.ShapeDtypeStruct((B, D), jnp.float32),      # att_feats
        jax.ShapeDtypeStruct((B, A), jnp.float32),      # weight (lane-dense)
    )

    grid_spec = pltpu.PrefetchScalarGridSpec(
        num_scalar_prefetch=0,
        grid=grid,
        in_specs=[
            pl.BlockSpec((tile_b, K), lambda b: (b, 0)),        # key (bf16)
            pl.BlockSpec((tile_b, A, D), lambda b: (b, 0, 0)),  # feats (bf16)
            pl.BlockSpec((tile_b, A), lambda b: (b, 0)),        # mask (f32)
            pl.BlockSpec((K, H), lambda b: (0, 0)),             # Wk (bf16)
            pl.BlockSpec((D, H), lambda b: (0, 0)),             # Wf (bf16)
            pl.BlockSpec((2, H), lambda b: (0, 0)),             # [bias; wa] (f32)
            pl.BlockSpec((1, 1), lambda b: (0, 0)),             # ba (f32)
        ],
        out_specs=[
            pl.BlockSpec((tile_b, D), lambda b: (b, 0)),
            pl.BlockSpec((tile_b, A), lambda b: (b, 0)),
        ],
    )

    att_feats, weight = pl.pallas_call(
        attention_kernel,
        out_shape=out_shape,
        grid_spec=grid_spec,
        compiler_params=pltpu.CompilerParams(
            dimension_semantics=("parallel",),
            vmem_limit_bytes=vmem_limit_bytes),
    )(key_bf, feats_bf, mask2, wk_bf, wf_bf, small, ba)

    return att_feats, weight


def attention_reference(key_vec, feats, feat_masks, params):
    """Plain-JAX f32 reference matching the PyTorch module (eval mode)."""
    att_f = feats @ params["wf"] + params["bf"][0]               # (B, A, H)
    att_k = key_vec @ params["wk"] + params["bk"][0]             # (B, H)
    dot = jnp.tanh(att_f + att_k[:, None, :])                    # (B, A, H)
    alpha = (dot @ params["wa"])[..., 0] + params["ba"][0, 0]    # (B, A)
    alpha = jnp.where(feat_masks.astype(jnp.float32) == 0.0,
                      jnp.float32(-1000000000.0), alpha)
    w = jax.nn.softmax(alpha, axis=1)                            # (B, A)
    att = jnp.einsum("ba,bad->bd", w, feats)                     # (B, D)
    return att, w


def init_params(rng, kdim, cdim, hdim):
    k1, k2, k3, k4, k5, k6 = jax.random.split(rng, 6)
    scale = 0.1
    return {
        # stored as (in_dim, out_dim)
        "wk": (scale * jax.random.normal(k1, (kdim, hdim))).astype(jnp.float32),
        "bk": (scale * jax.random.normal(k2, (1, hdim))).astype(jnp.float32),
        "wf": (scale * jax.random.normal(k3, (cdim, hdim))).astype(jnp.float32),
        "bf": (scale * jax.random.normal(k4, (1, hdim))).astype(jnp.float32),
        "wa": (scale * jax.random.normal(k5, (hdim, 1))).astype(jnp.float32),
        "ba": (scale * jax.random.normal(k6, (1, 1))).astype(jnp.float32),
    }


if __name__ == "__main__":
    B, A = 2, 16
    kdim, cdim, hdim = 32, 32, 32

    root = jax.random.PRNGKey(0)
    r_key, r_feat, r_par = jax.random.split(root, 3)

    key_vec = jax.random.normal(r_key, (B, kdim), dtype=jnp.float32)
    feats = jax.random.normal(r_feat, (B, A, cdim), dtype=jnp.float32)
    lengths = jnp.array([A, A - 6], dtype=jnp.int32)
    feat_masks = (jnp.arange(A)[None, :] < lengths[:, None]).astype(jnp.float32)

    params = init_params(r_par, kdim, cdim, hdim)

    att_feats, weight = attention_forward(key_vec, feats, feat_masks, params)
    jax.block_until_ready((att_feats, weight))

    ref_att, ref_w = attention_reference(key_vec, feats, feat_masks, params)
    assert att_feats.shape == (B, cdim) and weight.shape == (B, A)
    # bf16 MXU operands => deliberately loosened tolerance vs. the f32
    # reference (expected drift ~1e-2).
    assert jnp.allclose(att_feats, ref_att, atol=3e-2, rtol=3e-2), \
        float(jnp.max(jnp.abs(att_feats - ref_att)))
    assert jnp.allclose(weight, ref_w, atol=3e-2, rtol=3e-2), \
        float(jnp.max(jnp.abs(weight - ref_w)))

    print("KERNEL_OK")
</pallas_src>

<mosaic_0001>
module attributes {stable_mosaic.version = 11 : i64} {
  func.func @attention_kernel(%arg0: i32, %arg1: memref<2x32xbf16, #tpu.memory_space<vmem>>, %arg2: memref<2x16x32xbf16, #tpu.memory_space<vmem>>, %arg3: memref<2x16xf32, #tpu.memory_space<vmem>>, %arg4: memref<32x32xbf16, #tpu.memory_space<vmem>>, %arg5: memref<32x32xbf16, #tpu.memory_space<vmem>>, %arg6: memref<2x32xf32, #tpu.memory_space<vmem>>, %arg7: memref<1x1xf32, #tpu.memory_space<vmem>>, %arg8: memref<2x32xf32, #tpu.memory_space<vmem>>, %arg9: memref<2x16xf32, #tpu.memory_space<vmem>>) attributes {dimension_semantics = [#tpu.dimension_semantics<parallel>], iteration_bounds = array<i64: 1>, scalar_prefetch = 0 : i64, scratch_operands = 0 : i64, tpu.core_type = #tpu.core_type<tc>, window_params = [{transform_indices = @transform_0, window_bounds = array<i64: 2, 32>}, {transform_indices = @transform_1, window_bounds = array<i64: 2, 16, 32>}, {transform_indices = @transform_2, window_bounds = array<i64: 2, 16>}, {pipeline_mode = #tpu.pipeline_mode<synchronous>, transform_indices = @transform_3, window_bounds = array<i64: 32, 32>}, {pipeline_mode = #tpu.pipeline_mode<synchronous>, transform_indices = @transform_4, window_bounds = array<i64: 32, 32>}, {pipeline_mode = #tpu.pipeline_mode<synchronous>, transform_indices = @transform_5, window_bounds = array<i64: 2, 32>}, {pipeline_mode = #tpu.pipeline_mode<synchronous>, transform_indices = @transform_6, window_bounds = array<i64: 1, 1>}, {transform_indices = @transform_7, window_bounds = array<i64: 2, 32>}, {transform_indices = @transform_8, window_bounds = array<i64: 2, 16>}]} {
    %c0 = arith.constant 0 : index
    %c0_0 = arith.constant 0 : index
    %c0_1 = arith.constant 0 : index
    %0 = vector.load %arg2[%c0, %c0_0, %c0_1] : memref<2x16x32xbf16, #tpu.memory_space<vmem>>, vector<2x16x32xbf16>
    %1 = vector.shape_cast %0 : vector<2x16x32xbf16> to vector<32x32xbf16>
    %c0_2 = arith.constant 0 : index
    %c0_3 = arith.constant 0 : index
    %2 = vector.load %arg5[%c0_2, %c0_3] : memref<32x32xbf16, #tpu.memory_space<vmem>>, vector<32x32xbf16>
    %cst = arith.constant dense<0.000000e+00> : vector<32x32xf32>
    %3 = tpu.matmul %1, %2, %cst {dimension_numbers = #tpu.dot_dimension_numbers<[1], [0], [0], [1], [0, 0, 1, 1], [], []>} : vector<32x32xbf16>, vector<32x32xbf16>, vector<32x32xf32> -> vector<32x32xf32>
    %c0_4 = arith.constant 0 : index
    %c0_5 = arith.constant 0 : index
    %4 = vector.load %arg6[%c0_4, %c0_5] : memref<2x32xf32, #tpu.memory_space<vmem>>, vector<1x32xf32>
    %c1 = arith.constant 1 : index
    %c0_6 = arith.constant 0 : index
    %5 = vector.load %arg6[%c1, %c0_6] : memref<2x32xf32, #tpu.memory_space<vmem>>, vector<1x32xf32>
    %c0_7 = arith.constant 0 : index
    %c0_8 = arith.constant 0 : index
    %6 = vector.load %arg1[%c0_7, %c0_8] : memref<2x32xbf16, #tpu.memory_space<vmem>>, vector<2x32xbf16>
    %c0_9 = arith.constant 0 : index
    %c0_10 = arith.constant 0 : index
    %7 = vector.load %arg4[%c0_9, %c0_10] : memref<32x32xbf16, #tpu.memory_space<vmem>>, vector<32x32xbf16>
    %cst_11 = arith.constant dense<0.000000e+00> : vector<2x32xf32>
    %8 = tpu.matmul %6, %7, %cst_11 {dimension_numbers = #tpu.dot_dimension_numbers<[1], [0], [0], [1], [0, 0, 1, 1], [], []>} : vector<2x32xbf16>, vector<32x32xbf16>, vector<2x32xf32> -> vector<2x32xf32>
    %9 = vector.broadcast %4 : vector<1x32xf32> to vector<2x32xf32>
    %10 = arith.addf %8, %9 : vector<2x32xf32>
    %11 = vector.shape_cast %3 : vector<32x32xf32> to vector<2x16x32xf32>
    %12 = vector.shape_cast %10 : vector<2x32xf32> to vector<2x1x32xf32>
    %13 = vector.broadcast %12 : vector<2x1x32xf32> to vector<2x16x32xf32>
    %14 = arith.addf %11, %13 : vector<2x16x32xf32>
    %15 = math.tanh %14 : vector<2x16x32xf32>
    %16 = vector.shape_cast %5 : vector<1x32xf32> to vector<1x1x32xf32>
    %17 = vector.broadcast %16 : vector<1x1x32xf32> to vector<2x16x32xf32>
    %18 = arith.mulf %15, %17 : vector<2x16x32xf32>
    %cst_12 = arith.constant dense<0.000000e+00> : vector<2x16xf32>
    %19 = vector.multi_reduction <add>, %18, %cst_12 [2] : vector<2x16x32xf32> to vector<2x16xf32>
    %c0_13 = arith.constant 0 : index
    %c0_14 = arith.constant 0 : index
    %20 = vector.load %arg7[%c0_13, %c0_14] : memref<1x1xf32, #tpu.memory_space<vmem>>, vector<1x1xf32>
    %21 = vector.broadcast %20 : vector<1x1xf32> to vector<2x16xf32>
    %22 = arith.addf %19, %21 : vector<2x16xf32>
    %c0_15 = arith.constant 0 : index
    %c0_16 = arith.constant 0 : index
    %23 = vector.load %arg3[%c0_15, %c0_16] : memref<2x16xf32, #tpu.memory_space<vmem>>, vector<2x16xf32>
    %cst_17 = arith.constant 0.000000e+00 : f32
    %24 = vector.broadcast %cst_17 : f32 to vector<2x16xf32>
    %25 = arith.cmpf oeq, %23, %24 : vector<2x16xf32>
    %cst_18 = arith.constant -1.000000e+09 : f32
    %26 = vector.broadcast %cst_18 : f32 to vector<2x16xf32>
    %27 = arith.select %25, %26, %22 : vector<2x16xi1>, vector<2x16xf32>
    %cst_19 = arith.constant dense<0xFF800000> : vector<2xf32>
    %28 = vector.multi_reduction <maximumf>, %27, %cst_19 [1] : vector<2x16xf32> to vector<2xf32>
    %29 = vector.shape_cast %28 : vector<2xf32> to vector<2x1xf32>
    %30 = vector.broadcast %29 : vector<2x1xf32> to vector<2x16xf32>
    %31 = arith.subf %27, %30 : vector<2x16xf32>
    %32 = math.exp %31 : vector<2x16xf32>
    %cst_20 = arith.constant dense<0.000000e+00> : vector<2xf32>
    %33 = vector.multi_reduction <add>, %32, %cst_20 [1] : vector<2x16xf32> to vector<2xf32>
    %34 = vector.shape_cast %33 : vector<2xf32> to vector<2x1xf32>
    %35 = tpu.reciprocal %34 {approx = true} : vector<2x1xf32> -> vector<2x1xf32>
    %36 = vector.broadcast %35 : vector<2x1xf32> to vector<2x16xf32>
    %37 = arith.mulf %32, %36 : vector<2x16xf32>
    %38 = vector.shape_cast %37 : vector<2x16xf32> to vector<2x1x16xf32>
    %39 = arith.truncf %38 : vector<2x1x16xf32> to vector<2x1x16xbf16>
    "tpu.trace_start"() <{level = 10 : i32, message = "tqa,tad->tqd"}> : () -> ()
    %cst_21 = arith.constant dense<0.000000e+00> : vector<2x1x32xf32>
    %40 = tpu.matmul %39, %0, %cst_21 {dimension_numbers = #tpu.dot_dimension_numbers<[2], [1], [1], [2], [0, 0, 0, 1, 1, 2], [0], [0]>} : vector<2x1x16xbf16>, vector<2x16x32xbf16>, vector<2x1x32xf32> -> vector<2x1x32xf32>
    "tpu.trace_stop"() : () -> ()
    %41 = vector.shape_cast %40 : vector<2x1x32xf32> to vector<2x32xf32>
    %c0_22 = arith.constant 0 : index
    %c0_23 = arith.constant 0 : index
    %42 = vector.load %arg8[%c0_22, %c0_23] : memref<2x32xf32, #tpu.memory_space<vmem>>, vector<2x32xf32>
    tpu.vector_store %arg8[%c0_22, %c0_23], %41 {strides = array<i32>} : memref<2x32xf32, #tpu.memory_space<vmem>>, vector<2x32xf32>,
    %c0_24 = arith.constant 0 : index
    %c0_25 = arith.constant 0 : index
    %43 = vector.load %arg9[%c0_24, %c0_25] : memref<2x16xf32, #tpu.memory_space<vmem>>, vector<2x16xf32>
    tpu.vector_store %arg9[%c0_24, %c0_25], %37 {strides = array<i32>} : memref<2x16xf32, #tpu.memory_space<vmem>>, vector<2x16xf32>,
    return
  }
  func.func @transform_0(%arg0: i32) -> (i32, i32) {
    %c0_i32 = arith.constant 0 : i32
    %c0_i32_0 = arith.constant 0 : i32
    return %arg0, %c0_i32 : i32, i32
  }
  func.func @transform_1(%arg0: i32) -> (i32, i32, i32) {
    %c0_i32 = arith.constant 0 : i32
    %c0_i32_0 = arith.constant 0 : i32
    %c0_i32_1 = arith.constant 0 : i32
    return %arg0, %c0_i32, %c0_i32_0 : i32, i32, i32
  }
  func.func @transform_2(%arg0: i32) -> (i32, i32) {
    %c0_i32 = arith.constant 0 : i32
    %c0_i32_0 = arith.constant 0 : i32
    return %arg0, %c0_i32 : i32, i32
  }
  func.func @transform_3(%arg0: i32) -> (i32, i32) {
    %c0_i32 = arith.constant 0 : i32
    %c0_i32_0 = arith.constant 0 : i32
    %c0_i32_1 = arith.constant 0 : i32
    return %c0_i32, %c0_i32_0 : i32, i32
  }
  func.func @transform_4(%arg0: i32) -> (i32, i32) {
    %c0_i32 = arith.constant 0 : i32
    %c0_i32_0 = arith.constant 0 : i32
    %c0_i32_1 = arith.constant 0 : i32
    return %c0_i32, %c0_i32_0 : i32, i32
  }
  func.func @transform_5(%arg0: i32) -> (i32, i32) {
    %c0_i32 = arith.constant 0 : i32
    %c0_i32_0 = arith.constant 0 : i32
    %c0_i32_1 = arith.constant 0 : i32
    return %c0_i32, %c0_i32_0 : i32, i32
  }
  func.func @transform_6(%arg0: i32) -> (i32, i32) {
    %c0_i32 = arith.constant 0 : i32
    %c0_i32_0 = arith.constant 0 : i32
    %c0_i32_1 = arith.constant 0 : i32
    return %c0_i32, %c0_i32_0 : i32, i32
  }
  func.func @transform_7(%arg0: i32) -> (i32, i32) {
    %c0_i32 = arith.constant 0 : i32
    %c0_i32_0 = arith.constant 0 : i32
    return %arg0, %c0_i32 : i32, i32
  }
  func.func @transform_8(%arg0: i32) -> (i32, i32) {
    %c0_i32 = arith.constant 0 : i32
    %c0_i32_0 = arith.constant 0 : i32
    return %arg0, %c0_i32 : i32, i32
  }
}

</mosaic_0001>

<bundles_post_ra>
// kernel: tpu_custom_call.1
= control target key start
LH: loop header
LB: loop body
LE: loop exit
PB: predicated region body
PF: predicated region fallthrough
CT: control target
= control target key end

     0   :  { %s861_s0 = inlined_call_operand.hbm [shape: bf16[2,32], index: 0, kind: input, shape index: {}]   ;;  %s862_s1 = inlined_call_operand.hbm [shape: bf16[2,16,32], index: 1, kind: input, shape index: {}]   ;;  %s863_s2 = inlined_call_operand.vmem [shape: f32[2,16], index: 2, kind: input, shape index: {}]   ;;  %s864_s3 = inlined_call_operand.hbm [shape: bf16[32,32], index: 3, kind: input, shape index: {}]   ;;  %s865_s4 = inlined_call_operand.vmem [shape: bf16[32,32], index: 4, kind: input, shape index: {}]   ;;  %s866_s5 = inlined_call_operand.vmem [shape: f32[2,32], index: 5, kind: input, shape index: {}]   ;;  %s867_s6 = inlined_call_operand.<no memory space> [shape: f32[1,1], index: 6, kind: input, shape index: {}]   ;;  %s868_s7 = inlined_call_operand.hbm [shape: f32[2,32], index: 7, kind: output, shape index: {0}]   ;;  %s869_s8 = inlined_call_operand.hbm [shape: f32[2,16], index: 8, kind: output, shape index: {1}]  }
   0x1   :  { %v14_v0 = vstv %s867_s6 }
   0x2   :  { %15 = vst [vmem:[#allocation2] sm:$0x1] %v14_v0 }
   0x3   :  { %16 = vsyncpa [#allocation4], 0 }
   0x4   :  { %17 = vsyncpa [#allocation7], 0 }
   0x5   :  { %18 = vsyncpa [#allocation5], 0 }
   0x6   :  { %19 = vsyncpa [#allocation11], 0  ;;  %s698_s29 = smov [#allocation6]   ;;  %s580_s11 = scalar_lea.hbm %s862_s1, 256 }
   0x7   :  { %s35_s30 = sshll.u32 %s698_s29, 4  ;;  %p581_p0 = scmp.ne.s32.totalorder %s862_s1, %s580_s11  ;;  %s36_s30 = int_to_ptr.vmem [resolvable:$true] %s35_s30 }
   0x8   :  { %p584_p1 = scmp.lt.u32.totalorder %s580_s11, %s862_s1 }
   0xa   :  { %p586_p2 = pnand %p584_p1, %p581_p0 }
   0xc   :  { %589 = shalt.err (!%p586_p2)
}
   0xd   :  { %s590_s6 = scalar_lea.vmem %s36_s30, 256  ;;  %p595_p4 = scmp.lt.s32.totalorder %s36_s30, %s36_s30 }
   0xe   :  { %p591_p3 = scmp.ne.s32.totalorder %s36_s30, %s590_s6  ;;  %p596_p5 = scmp.lt.s32.totalorder %s590_s6, %s590_s6 }
  0x10   :  { %p597_p6 = por %p596_p5, %p595_p4 }
  0x12   :  { %p598_p7 = pnand %p597_p6, %p591_p3 }
  0x14   :  { %601 = shalt.err (!%p598_p7)
}
  0x15   :  { %s699_s16 = smov 64   ;;  %s700_s17 = smov 4  }
  0x16   :  { %41 = dma.hbm_to_vmem [thread:$0]  %s862_s1, 256, %s36_s30, [#allocation7], %s699_s16, %s699_s16, %s700_s17  }
  0x17   :  { %s701_s20 = smov [#allocation3]   ;;  %s702_s22 = smov [#allocation8]  }
  0x18   :  { %s26_s21 = sshll.u32 %s701_s20, 4  ;;  %s49_s23 = sshll.u32 %s702_s22, 4  ;;  %s27_s21 = int_to_ptr.vmem [resolvable:$true] %s26_s21  ;;  %s50_s23 = int_to_ptr.vmem [resolvable:$true] %s49_s23 }
  0x19   :  { %s602_s26 = scalar_lea.hbm %s861_s0, 16 }
  0x1a   :  { %p603_p8 = scmp.ne.s32.totalorder %s861_s0, %s602_s26  ;;  %p606_p9 = scmp.lt.u32.totalorder %s602_s26, %s861_s0 }
  0x1c   :  { %p608_p10 = pnand %p606_p9, %p603_p8 }
  0x1e   :  { %611 = shalt.err (!%p608_p10)
}
  0x1f   :  { %s612_s1 = scalar_lea.vmem %s27_s21, 16  ;;  %s616_s30 = scalar_lea.vmem %s27_s21, 32 }
  0x20   :  { %p613_p11 = scmp.ne.s32.totalorder %s27_s21, %s612_s1  ;;  %p617_p12 = scmp.lt.s32.totalorder %s27_s21, %s27_s21 }
  0x21   :  { %p618_p13 = scmp.lt.s32.totalorder %s616_s30, %s612_s1 }
  0x23   :  { %p619_p0 = por %p618_p13, %p617_p12 }
  0x25   :  { %p620_p1 = pnand %p619_p0, %p613_p11 }
  0x27   :  { %623 = shalt.err (!%p620_p1)
}
  0x28   :  { %29 = dma.hbm_to_vmem [thread:$0]  %s861_s0, 16, %s27_s21, [#allocation4]  }
  0x29   :  { %s624_s14 = scalar_lea.hbm %s864_s3, 256 }
  0x2a   :  { %p625_p2 = scmp.ne.s32.totalorder %s864_s3, %s624_s14  ;;  %p628_p3 = scmp.lt.u32.totalorder %s624_s14, %s864_s3 }
  0x2c   :  { %p630_p4 = pnand %p628_p3, %p625_p2 }
  0x2e   :  { %633 = shalt.err (!%p630_p4)
}
  0x2f   :  { %s634_s20 = scalar_lea.vmem %s50_s23, 256  ;;  %p639_p6 = scmp.lt.s32.totalorder %s50_s23, %s50_s23 }
  0x30   :  { %p635_p5 = scmp.ne.s32.totalorder %s50_s23, %s634_s20  ;;  %p640_p7 = scmp.lt.s32.totalorder %s634_s20, %s634_s20 }
  0x32   :  { %p641_p8 = por %p640_p7, %p639_p6 }
  0x34   :  { %p642_p9 = pnand %p641_p8, %p635_p5 }
  0x36   :  { %645 = shalt.err (!%p642_p9)
}
  0x37   :  { %55 = dma.hbm_to_vmem [thread:$0]  %s864_s3, 256, %s50_s23, [#allocation7], %s699_s16, %s699_s16, %s700_s17  }
  0x38   :  { %690 = dma.done.wait [#allocation4], 16  }
  0x39   :  { %691 = vsyncadd [#allocation4], 4294967280 }
  0x3a   :  { %692 = dma.done.wait [#allocation7], 512  }
  0x3b   :  { %693 = vsyncadd [#allocation7], 4294966784  ;;  %v703_v1 = vmov 0.0   ;;  %vm704_vm0 = vmmov 0   ;;  %v562_v2 = vld [vmem:[#allocation8] sm:$0xff]   ;;  %v563_v3 = vld [vmem:[%s865_s4] sm:$0xff]   ;;  %v228_v12 = vlaneseq }
  0x3c   :  { %530 = vmatprep.subr.bf16.mxu1 %v703_v1  ;;  %534 = vmatprep.mubr.msk.bf16.mxu1 %vm704_vm0, %v703_v1  ;;  %v564_v4 = vld [vmem:[#allocation8 + $0x8] sm:$0xff]   ;;  %v565_v5 = vld [vmem:[%s865_s4 + $0x8] sm:$0xff]   ;;  %vm102_vm1 = vcmask 261120   ;;  %v705_v9 = vmov 0   ;;  %v706_v10 = vmov 1966171168  }
  0x3d   :  { %531 = vmatpush3.bf16.msra.mxu1 %v562_v2  ;;  %522 = vmatprep.subr.bf16.mxu0 %v563_v3  ;;  %v566_v6 = vld [vmem:[#allocation6] sm:$0xff]   ;;  %v160_v7 = vld [vmem:[#allocation3] sm:$0x1]  ;;  %v567_v8 = vld [vmem:[#allocation6 + $0x8] sm:$0xff]   ;;  %v226_v11 = vunpack.c.l.s4 %v706_v10  ;;  %v229_v14 = vshrl.u32 %v228_v12, 7  ;;  %v306_v52 = vand.u32 127, %v228_v12 }
  0x3e   :  { %532 = vmatprep.subr.bf16.mxu1 %v703_v1  ;;  %523 = vmatpush3.bf16.msra.mxu0 %v563_v3  ;;  %v503_v15 = vld [vmem:[%s866_s5] ss:$0 sm:$0xff]  ;;  %v507_v37 = vld [vmem:[%s866_s5 + $0x1] ss:$0 sm:$0xff]  ;;  %vm316_vm2 = vcmask 130112   ;;  %vm327_vm3 = vcmask 1041409  }
  0x3f   :  { %524 = vmatprep.subr.bf16.mxu0 %v565_v5  ;;  %526 = vmatprep.mubr.msk.bf16.mxu0 %vm102_vm1, %v566_v6  ;;  %v227_v13 = vunpack.c.0.s8 %v226_v11  ;;  %v249_v24 = vsub.s32 0, %v229_v14  ;;  %v508_v50 = vld [vmem:[#allocation2] ss:$0 sm:$0xff]  ;;  %v311_v54 = vadd.s32 4294967288, %v306_v52  ;;  %v309_v56 = vsub.s32 %v306_v52, %v229_v14 }
  0x40   :  { %561 = vset.pattern.permute.xlu0 %v705_v9  ;;  %v299_v0 = vld [vmem:[%s863_s2] sm:$0x3]  ;;  %vm331_vm5 = vcmask 123904   ;;  %vm371_vm6 = vcmask 130048   ;;  %s707_s2 = smov [#allocation10]  }
  0x41   :  { %533 = vmatpush3.bf16.msra.mxu1 %v564_v4  ;;  %v814_v16 = vsub.s32 %v227_v13, %v229_v14  ;;  %v314_v57 = vsub.s32 %v311_v54, %v229_v14  ;;  %vm300_vm4 = vcmp.eq.f32.partialorder %v299_v0, 0.0  ;;  %s483_s27 = sshll.u32 %s707_s2, 4  ;;  %s484_s27 = int_to_ptr.vmem [resolvable:$true] %s483_s27 }
  0x42   :  { %544 = vmatprep.subr.bf16.mxu1 %v703_v1  ;;  %525 = vmatpush3.bf16.msra.mxu0 %v565_v5  ;;  %s646_s28 = scalar_lea.vmem %s484_s27, 32  ;;  %p651_p11 = scmp.lt.s32.totalorder %s484_s27, %s484_s27 }
  0x43   :  { %538 = vmatprep.subr.bf16.mxu0 %v703_v1  ;;  %p647_p10 = scmp.ne.s32.totalorder %s484_s27, %s646_s28  ;;  %p652_p12 = scmp.lt.s32.totalorder %s646_s28, %s646_s28 }
  0x44   :  { %535 = vmatmul.mubr.msk.bf16.vlgmr.msra.gmra.mrb[0].mxu1 %vm102_vm1, %v160_v7 }
  0x45   :  { %545 = vmatpush3.bf16.msra.mxu1 %v567_v8  ;;  %546 = vmatprep.mubr.msk.bf16.mxu1 %vm704_vm0, %v703_v1  ;;  %p653_p13 = por %p652_p12, %p651_p11 }
  0x46   :  { %527 = vmatmul.mubr.msk.bf16.vlgmr.msra.gmra.mrb[0].mxu0 %vm102_vm1, %v567_v8 }
  0x47   :  { %539 = vmatpush3.bf16.msra.mxu0 %v566_v6  ;;  %540 = vmatprep.mubr.msk.bf16.mxu0 %vm704_vm0, %v703_v1  ;;  %p654_p0 = pnand %p653_p13, %p647_p10 }
 0x117   :  { %v218_v17 = vpop.f32.mrb[0].mxu1 }
 0x118   :  { %v219_v18 = vadd.f32 %v503_v15, %v218_v17  ;;  %v536_v19 = vpop.f32.mrb[1].mxu1 }
 0x119   :  { %v221_v20 = vpop.f32.mrb[2].mxu1  ;;  %v528_v21 = vpop.f32.mrb[0].mxu0 }
 0x11a   :  { %v231_v22 = vrot.slane %v219_v18, %v814_v16  ;;  %v537_v23 = vpop.f32.mrb[3].mxu1  ;;  %v143_v25 = vpop.f32.mrb[1].mxu0 }
 0x11b   :  { %v529_v26 = vpop.f32.mrb[2].mxu0 }
 0x11c   :  { %v232_v27 = vcombine.high %v231_v22, %v231_v22  ;;  %v239_v28 = vrot.slane %v231_v22, %v814_v16  ;;  %v146_v29 = vpop.f32.mrb[3].mxu0 }
 0x11e   :  { %v246_v30 = vrot.slane %v232_v27, %v814_v16  ;;  %v250_v31 = vrot.slane %v239_v28, %v249_v24 }
 0x120   :  { %v254_v32 = vrot.slane %v246_v30, %v249_v24  ;;  %v257_v33 = vadd.f32 %v250_v31, %v143_v25  ;;  %v258_v34 = vadd.f32 %v250_v31, %v146_v29 }
 0x122   :  { %v259_v35 = vadd.f32 %v528_v21, %v254_v32  ;;  %568 = vtanh.f32 %v257_v33  ;;  %v260_v36 = vadd.f32 %v529_v26, %v254_v32 }
 0x123   :  { %570 = vtanh.f32 %v258_v34 }
 0x124   :  { %572 = vtanh.f32 %v259_v35 }
 0x125   :  { %574 = vtanh.f32 %v260_v36 }
 0x12c   :  { %v569_v38 = vpop.eup %568 }
 0x12d   :  { %v571_v39 = vpop.eup %570  ;;  %v269_v40 = vmul.f32 %v569_v38, %v507_v37 }
 0x12e   :  { %v573_v41 = vpop.eup %572  ;;  %v270_v45 = vmul.f32 %v571_v39, %v507_v37 }
 0x12f   :  { %v575_v42 = vpop.eup %574  ;;  %v273_v43 = vsel %vm102_vm1, %v269_v40, 0.0  ;;  %v271_v44 = vmul.f32 %v573_v41, %v507_v37 }
 0x130   :  { %274 = vadd.xlane.f32.xlu0 %v273_v43  ;;  %v272_v47 = vmul.f32 %v575_v42, %v507_v37  ;;  %v276_v48 = vsel %vm102_vm1, %v270_v45, 0.0 }
 0x131   :  { %v279_v46 = vsel %vm102_vm1, %v271_v44, 0.0 }
 0x132   :  { %280 = vadd.xlane.f32.xlu1 %v279_v46  ;;  %v282_v49 = vsel %vm102_vm1, %v272_v47, 0.0 }
 0x134   :  { %277 = vadd.xlane.f32.xlu0 %v276_v48 }
 0x136   :  { %283 = vadd.xlane.f32.xlu1 %v282_v49 }
 0x14a   :  { %292 = vperm.xlu0 %561, %v508_v50  }
 0x1bd   :  { %v275_v51 = vpop.xlane.xlu0 %274 }
 0x1bf   :  { %v281_v53 = vpop.xlane.xlu1 %280 }
 0x1c1   :  { %v278_v55 = vpop.xlane.xlu0 %277 }
 0x1c3   :  { %v284_v58 = vpop.xlane.xlu1 %283 }
 0x1c9   :  { %v293_v59 = vpop.permute.xlu0 %292 }
 0x1ca   :  { %v295_v60 = vadd.f32 %v293_v59, %v275_v51  ;;  %v296_v61 = vadd.f32 %v293_v59, %v278_v55  ;;  %v297_v62 = vadd.f32 %v293_v59, %v281_v53  ;;  %v298_v63 = vadd.f32 %v293_v59, %v284_v58 }
 0x1cc   :  { %v310_v1 = vrot.slane %v295_v60, %v309_v56  ;;  %v315_v2 = vrot.slane %v296_v61, %v314_v57  ;;  %v321_v3 = vrot.slane %v297_v62, %v309_v56  ;;  %v325_v4 = vrot.slane %v298_v63, %v314_v57 }
 0x1ce   :  { %v317_v5 = vsel %vm316_vm2, %v315_v2, %v310_v1  ;;  %v326_v6 = vsel %vm316_vm2, %v325_v4, %v321_v3 }
 0x1cf   :  { %v328_v7 = vsel %vm327_vm3, %v326_v6, %v317_v5 }
 0x1d0   :  { %v330_v8 = vsel %vm300_vm4, -1e+09, %v328_v7 }
 0x1d1   :  { %v332_v9 = vsel %vm331_vm5, %v330_v8, -inf }
 0x1d2   :  { %333 = vmax.xlane.f32.xlu1 %v332_v9 }
 0x25f   :  { %v334_v10 = vpop.xlane.xlu1 %333 }
 0x260   :  { %v335_v11 = vsub.f32 %v330_v8, %v334_v10 }
 0x262   :  { %v336_v12 = vmul.f32 1.442695, %v335_v11 }
 0x264   :  { %576 = vpow2.f32 %v336_v12 }
 0x26e   :  { %v577_v13 = vpop.eup %576 }
 0x26f   :  { %v338_v14 = vsel %vm331_vm5, %v577_v13, 0.0 }
 0x270   :  { %339 = vadd.xlane.f32.xlu1 %v338_v14 }
 0x2fd   :  { %v340_v15 = vpop.xlane.xlu1 %339 }
 0x2fe   :  { %578 = vrcp.f32 %v340_v15 }
 0x308   :  { %v579_v17 = vpop.eup %578 }
 0x309   :  { %v342_v18 = vmul.f32 %v579_v17, %v577_v13 }
 0x30b   :  { %v350_v19 = vrot.slane %v342_v18, %v814_v16  ;;  %466 = vst.msk [vmem:[#allocation10] sm:$0x3] %vm331_vm5, %v342_v18 }
 0x30d   :  { %v358_v20 = vrot.slane %v350_v19, %v814_v16  ;;  %v351_v21 = vcombine.high %v350_v19, %v350_v19 }
 0x30f   :  { %v368_v22 = vpack.c.bf16 %v358_v20, %v358_v20  ;;  %v365_v23 = vrot.slane %v351_v21, %v814_v16 }
 0x311   :  { %541 = vmatmul.mubr.msk.bf16.vlgmr.msra.gmra.mrb[4].mxu0 %vm371_vm6, %v368_v22  ;;  %v369_v24 = vpack.c.bf16 %v365_v23, %v365_v23 }
 0x313   :  { %547 = vmatmul.mubr.msk.bf16.vlgmr.msra.gmra.mrb[4].mxu1 %vm371_vm6, %v369_v24 }
 0x314   :  { %657 = shalt.err (!%p654_p0)
}
 0x315   :  { %s658_s1 = scalar_lea.hbm %s869_s8, 32 }
 0x316   :  { %p659_p1 = scmp.ne.s32.totalorder %s869_s8, %s658_s1  ;;  %p662_p2 = scmp.lt.u32.totalorder %s658_s1, %s869_s8 }
 0x318   :  { %p664_p3 = pnand %p662_p2, %p659_p1 }
 0x31a   :  { %667 = shalt.err (!%p664_p3)
}
 0x31b   :  { %486 = dma.vmem_to_hbm [thread:$0]  %s484_s27, 32, %s869_s8, [#allocation11]   ;;  %vm464_vm7 = vcmask 254976  }
 0x31c   :  { %s708_s15 = smov [#allocation9]  }
 0x31d   :  { %s473_s6 = sshll.u32 %s708_s15, 4  ;;  %s474_s6 = int_to_ptr.vmem [resolvable:$true] %s473_s6 }
 0x31e   :  { %s668_s18 = scalar_lea.vmem %s474_s6, 32  ;;  %p673_p5 = scmp.lt.s32.totalorder %s474_s6, %s474_s6 }
 0x31f   :  { %p669_p4 = scmp.ne.s32.totalorder %s474_s6, %s668_s18  ;;  %p674_p6 = scmp.lt.s32.totalorder %s668_s18, %s668_s18 }
 0x321   :  { %p675_p7 = por %p674_p6, %p673_p5 }
 0x323   :  { %p676_p8 = pnand %p675_p7, %p669_p4 }
 0x3e4   :  { %v409_v16 = vpop.f32.mrb[4].mxu0 }
 0x3e5   :  { %v542_v25 = vpop.f32.mrb[5].mxu0 }
 0x3e6   :  { %v412_v26 = vpop.f32.mrb[6].mxu0  ;;  %v453_v27 = vpop.f32.mrb[4].mxu1 }
 0x3e7   :  { %v461_v28 = vrot.slane %v453_v27, 7  ;;  %v543_v29 = vpop.f32.mrb[7].mxu0  ;;  %v548_v30 = vpop.f32.mrb[5].mxu1 }
 0x3e8   :  { %v456_v31 = vpop.f32.mrb[6].mxu1 }
 0x3e9   :  { %v549_v32 = vpop.f32.mrb[7].mxu1  ;;  %v462_v33 = vsel %vm327_vm3, %v461_v28, %v409_v16 }
 0x3ea   :  { %465 = vst.msk [vmem:[#allocation9] sm:$0x3] %vm464_vm7, %v462_v33 }
 0x3eb   :  { %679 = shalt.err (!%p676_p8)
}
 0x3ec   :  { %s680_s20 = scalar_lea.hbm %s868_s7, 32 }
 0x3ed   :  { %p681_p9 = scmp.ne.s32.totalorder %s868_s7, %s680_s20  ;;  %p684_p10 = scmp.lt.u32.totalorder %s680_s20, %s868_s7 }
 0x3ef   :  { %p686_p11 = pnand %p684_p10, %p681_p9 }
 0x3f1   :  { %689 = shalt.err (!%p686_p11)
}
 0x3f2   :  { %476 = dma.vmem_to_hbm [thread:$0]  %s474_s6, 32, %s868_s7, [#allocation5]  }
 0x3f3   :  { %694 = dma.done.wait [#allocation5], 32  }
 0x3f4   :  { %695 = vsyncadd [#allocation5], 4294967264 }
 0x3f5   :  { %696 = dma.done.wait [#allocation11], 32  }
 0x3f6   :  { %697 = vsyncadd [#allocation11], 4294967264 }
 0x3f7   :  { %493 = vsyncpa [#allocation4], 1 }
 0x3f8   :  { %494 = vsyncpa [#allocation7], 1 }
 0x3f9   :  { %495 = vsyncpa [#allocation5], 1 }
 0x3fa   :  { %496 = vsyncpa [#allocation11], 1 }

</bundles_post_ra>
